<compile_context>
chip_gen: v7x
topology: tpu7x:2x2x1
jax: 0.10.0
libtpu: 0.0.40
codegen_flags: <defaults>
</compile_context>

<pallas_src>
import jax
import jax.numpy as jnp
from jax.experimental import pallas as pl
from jax.experimental.pallas import tpu as pltpu


def _up_kernel(x_ref, w_ref, b_ref, o_ref):
    # x_ref: (C_in, tm)       voxels on the lane axis, native input dtype
    # w_ref: (4*C_out, C_in)  fused taps, row = co*4 + kh*2 + kw, compute dtype
    # b_ref: (4*C_out, 1)     f32 bias per row (broadcast over lanes)
    # o_ref: (4*C_out, tm)    compute dtype, lane-dense stores
    x = x_ref[...].astype(w_ref.dtype)            # VPU cast; avoids an XLA pass over x
    acc = jnp.dot(w_ref[...], x, preferred_element_type=jnp.float32)
    o_ref[...] = (acc + b_ref[...]).astype(o_ref.dtype)


def up_forward(x_ncdhw, weight, bias, *, compute_dtype=jnp.bfloat16, out_dtype=None,
               tm=None, output_layout="ncdhw"):
    """Forward of Up: ConvTranspose3d(C_in, C_out, (1,2,2), stride=(1,2,2)).

    x_ncdhw: (N, C_in, D, H, W); weight: (C_in, C_out, 1, 2, 2); bias: (C_out,).
    output_layout="ncdhw"     -> (N, C_out, D, 2H, 2W), matching the PyTorch module.
    output_layout="tap_major" -> (N, C_out, 2, 2, D, H, W) with axes [n, co, kh, kw, d, h, w];
                                 skips the final XLA transpose (fast path).
    """
    N, C_in, D, H, W = x_ncdhw.shape
    C_out = weight.shape[1]
    M = D * H * W
    if out_dtype is None:
        out_dtype = x_ncdhw.dtype

    # --- free layout glue (no data movement) ----------------------------------
    x3 = x_ncdhw.reshape(N, C_in, M)                       # contiguous reshape of NCDHW

    # Fused weight slab: w_t[co*4 + kh*2 + kw, ci] = weight[ci, co, 0, kh, kw]  (tiny)
    w_t = jnp.transpose(weight[:, :, 0], (1, 2, 3, 0)).reshape(4 * C_out, C_in)
    w_t = w_t.astype(compute_dtype)
    b_t = jnp.repeat(bias.astype(jnp.float32), 4).reshape(4 * C_out, 1)

    # --- tile sizing from the VMEM budget --------------------------------------
    x_bytes = jnp.dtype(x_ncdhw.dtype).itemsize
    y_bytes = jnp.dtype(compute_dtype).itemsize
    col = C_in * x_bytes + 4 * C_out * y_bytes             # bytes per voxel column
    fixed = 2 * (4 * C_out * C_in * y_bytes) + 2 * (4 * C_out * 4)  # dbl-buffered W + bias
    if tm is None:
        budget = 40 * 1024 * 1024                          # safe on v5e/v6e/v7x
        tm = max((2 * 1024 * 1024) // col, 512)            # >= ~2 MiB moved per grid step
        tm = min(tm, max((budget - fixed) // (2 * col), 128))
    if tm >= M:
        tm = M                                             # single full tile (any M)
    else:
        tm = max(128, (tm // 128) * 128)                   # lane-aligned tiles
    n_tiles = pl.cdiv(M, tm)                               # ragged tail handled by Pallas

    need = 2 * col * tm + fixed + (2 << 20)
    vmem_limit = int(min(max(need, 32 * 1024 * 1024), 96 * 1024 * 1024))

    out = pl.pallas_call(
        _up_kernel,
        out_shape=jax.ShapeDtypeStruct((N, 4 * C_out, M), compute_dtype),
        grid=(N, n_tiles),
        in_specs=[
            pl.BlockSpec((None, C_in, tm), lambda n, i: (n, 0, i)),
            pl.BlockSpec((4 * C_out, C_in), lambda n, i: (0, 0)),   # constant -> no re-DMA
            pl.BlockSpec((4 * C_out, 1), lambda n, i: (0, 0)),
        ],
        out_specs=pl.BlockSpec((None, 4 * C_out, tm), lambda n, i: (n, 0, i)),
        compiler_params=pltpu.CompilerParams(
            dimension_semantics=("parallel", "parallel"),
            vmem_limit_bytes=vmem_limit),
    )(x3, w_t, b_t)

    # --- output glue ------------------------------------------------------------
    y = out.reshape(N, C_out, 2, 2, D, H, W)               # free: rows were (co, kh, kw)
    if output_layout == "tap_major":
        return y.astype(out_dtype)                         # no transpose pass
    # Single XLA transpose (on the bf16/compute-dtype tensor) + fused upcast to out_dtype.
    y = jnp.transpose(y, (0, 1, 4, 5, 2, 6, 3))            # (N, Co, D, H, kh, W, kw)
    return y.reshape(N, C_out, D, 2 * H, 2 * W).astype(out_dtype)


def _reference(x, weight, bias):
    # Independent check (no Pallas): explicit scatter of the 4 kernel taps, f32.
    N, C_in, D, H, W = x.shape
    C_out = weight.shape[1]
    ref = jnp.zeros((N, C_out, D, 2 * H, 2 * W), jnp.float32)
    for kh in range(2):
        for kw in range(2):
            contrib = jnp.einsum("ncdhw,co->nodhw", x, weight[:, :, 0, kh, kw])
            ref = ref.at[:, :, :, kh::2, kw::2].set(
                contrib + bias[None, :, None, None, None])
    return ref


if __name__ == "__main__":
    key = jax.random.PRNGKey(0)
    N, C_in, C_out, D, H, W = 2, 4, 8, 3, 16, 16

    k1, k2, k3 = jax.random.split(key, 3)
    x = jax.random.normal(k1, (N, C_in, D, H, W), jnp.float32)
    # ConvTranspose3d weight shape: (in_channels, out_channels, kD, kH, kW)
    weight = jax.random.normal(k2, (C_in, C_out, 1, 2, 2), jnp.float32) * 0.1
    bias = jax.random.normal(k3, (C_out,), jnp.float32) * 0.1

    ref = _reference(x, weight, bias)

    # Default path: bf16 compute, output cast back to the input dtype (module parity).
    y = jax.block_until_ready(up_forward(x, weight, bias))
    assert y.shape == (N, C_out, D, 2 * H, 2 * W), y.shape
    assert y.dtype == x.dtype, y.dtype
    assert jnp.allclose(y, ref, atol=5e-2, rtol=5e-2), float(jnp.abs(y - ref).max())

    # f32 compute path (tight tolerance).
    y32 = jax.block_until_ready(up_forward(x, weight, bias, compute_dtype=jnp.float32))
    assert jnp.allclose(y32, ref, atol=1e-3, rtol=1e-3), float(jnp.abs(y32 - ref).max())

    # Odd spatial dims: D*H*W = 126 < 128 -> single full (non-128-aligned) tile.
    x2 = jax.random.normal(k1, (1, C_in, 2, 7, 9), jnp.float32)
    y2 = jax.block_until_ready(up_forward(x2, weight, bias, compute_dtype=jnp.float32))
    ref2 = _reference(x2, weight, bias)
    assert jnp.allclose(y2, ref2, atol=1e-3, rtol=1e-3), float(jnp.abs(y2 - ref2).max())

    # Ragged last tile without any padding pass: M = 224, forced tm = 128 -> partial block.
    x3 = jax.random.normal(k1, (1, C_in, 2, 7, 16), jnp.float32)
    y3 = jax.block_until_ready(up_forward(x3, weight, bias, compute_dtype=jnp.float32, tm=128))
    ref3 = _reference(x3, weight, bias)
    assert jnp.allclose(y3, ref3, atol=1e-3, rtol=1e-3), float(jnp.abs(y3 - ref3).max())

    # Tap-major fast path (skips the final transpose); verify it re-arranges to the same result.
    yt = jax.block_until_ready(
        up_forward(x, weight, bias, compute_dtype=jnp.float32, output_layout="tap_major"))
    y_from_t = jnp.transpose(yt, (0, 1, 4, 5, 2, 6, 3)).reshape(N, C_out, D, 2 * H, 2 * W)
    assert jnp.allclose(y_from_t, ref, atol=1e-3, rtol=1e-3)

    print("KERNEL_OK")
</pallas_src>

<mosaic_0001>
module attributes {stable_mosaic.version = 11 : i64} {
  func.func @_up_kernel(%arg0: i32, %arg1: i32, %arg2: memref<1x4x768xf32, #tpu.memory_space<vmem>>, %arg3: memref<32x4xbf16, #tpu.memory_space<vmem>>, %arg4: memref<32x1xf32, #tpu.memory_space<vmem>>, %arg5: memref<1x32x768xbf16, #tpu.memory_space<vmem>>) attributes {dimension_semantics = [#tpu.dimension_semantics<parallel>, #tpu.dimension_semantics<parallel>], iteration_bounds = array<i64: 2, 1>, scalar_prefetch = 0 : i64, scratch_operands = 0 : i64, tpu.core_type = #tpu.core_type<tc>, window_params = [{transform_indices = @transform_0, window_bounds = array<i64: 1, 4, 768>}, {pipeline_mode = #tpu.pipeline_mode<synchronous>, transform_indices = @transform_1, window_bounds = array<i64: 32, 4>}, {pipeline_mode = #tpu.pipeline_mode<synchronous>, transform_indices = @transform_2, window_bounds = array<i64: 32, 1>}, {transform_indices = @transform_3, window_bounds = array<i64: 1, 32, 768>}]} {
    %c0 = arith.constant 0 : index
    %c0_0 = arith.constant 0 : index
    %c0_1 = arith.constant 0 : index
    %0 = vector.load %arg2[%c0, %c0_0, %c0_1] : memref<1x4x768xf32, #tpu.memory_space<vmem>>, vector<1x4x768xf32>
    %1 = vector.shape_cast %0 : vector<1x4x768xf32> to vector<4x768xf32>
    %2 = arith.truncf %1 : vector<4x768xf32> to vector<4x768xbf16>
    %c0_2 = arith.constant 0 : index
    %c0_3 = arith.constant 0 : index
    %3 = vector.load %arg3[%c0_2, %c0_3] : memref<32x4xbf16, #tpu.memory_space<vmem>>, vector<32x4xbf16>
    %cst = arith.constant dense<0.000000e+00> : vector<32x768xf32>
    %4 = tpu.matmul %3, %2, %cst {dimension_numbers = #tpu.dot_dimension_numbers<[1], [0], [0], [1], [0, 0, 1, 1], [], []>} : vector<32x4xbf16>, vector<4x768xbf16>, vector<32x768xf32> -> vector<32x768xf32>
    %c0_4 = arith.constant 0 : index
    %c0_5 = arith.constant 0 : index
    %5 = vector.load %arg4[%c0_4, %c0_5] : memref<32x1xf32, #tpu.memory_space<vmem>>, vector<32x1xf32>
    %6 = vector.broadcast %5 : vector<32x1xf32> to vector<32x768xf32>
    %7 = arith.addf %4, %6 : vector<32x768xf32>
    %8 = arith.truncf %7 : vector<32x768xf32> to vector<32x768xbf16>
    %c0_6 = arith.constant 0 : index
    %c0_7 = arith.constant 0 : index
    %c0_8 = arith.constant 0 : index
    %9 = vector.load %arg5[%c0_6, %c0_7, %c0_8] : memref<1x32x768xbf16, #tpu.memory_space<vmem>>, vector<1x32x768xbf16>
    %10 = vector.shape_cast %9 : vector<1x32x768xbf16> to vector<32x768xbf16>
    %11 = vector.shape_cast %8 : vector<32x768xbf16> to vector<1x32x768xbf16>
    tpu.vector_store %arg5[%c0_6, %c0_7, %c0_8], %11 {strides = array<i32>} : memref<1x32x768xbf16, #tpu.memory_space<vmem>>, vector<1x32x768xbf16>,
    return
  }
  func.func @transform_0(%arg0: i32, %arg1: i32) -> (i32, i32, i32) {
    %c0_i32 = arith.constant 0 : i32
    %c0_i32_0 = arith.constant 0 : i32
    return %arg0, %c0_i32, %arg1 : i32, i32, i32
  }
  func.func @transform_1(%arg0: i32, %arg1: i32) -> (i32, i32) {
    %c0_i32 = arith.constant 0 : i32
    %c0_i32_0 = arith.constant 0 : i32
    %c0_i32_1 = arith.constant 0 : i32
    return %c0_i32, %c0_i32_0 : i32, i32
  }
  func.func @transform_2(%arg0: i32, %arg1: i32) -> (i32, i32) {
    %c0_i32 = arith.constant 0 : i32
    %c0_i32_0 = arith.constant 0 : i32
    %c0_i32_1 = arith.constant 0 : i32
    return %c0_i32, %c0_i32_0 : i32, i32
  }
  func.func @transform_3(%arg0: i32, %arg1: i32) -> (i32, i32, i32) {
    %c0_i32 = arith.constant 0 : i32
    %c0_i32_0 = arith.constant 0 : i32
    return %arg0, %c0_i32, %arg1 : i32, i32, i32
  }
}

</mosaic_0001>

<bundles_post_ra>
// kernel: tpu_custom_call.1
= control target key start
LH: loop header
LB: loop body
LE: loop exit
PB: predicated region body
PF: predicated region fallthrough
CT: control target
= control target key end

     0   :  { %8 = vsyncpa [#allocation3], 0  ;;  %s1020_s0 = inlined_call_operand.vmem [shape: f32[2,4,768], index: 0, kind: input, shape index: {}]   ;;  %s1021_s1 = inlined_call_operand.vmem [shape: bf16[32,4], index: 1, kind: input, shape index: {}]   ;;  %s1022_s2 = inlined_call_operand.vmem [shape: f32[32,1], index: 2, kind: input, shape index: {}]   ;;  %s1023_s3 = inlined_call_operand.hbm [shape: bf16[2,32,768], index: 3, kind: output, shape index: {}]  }
   0x1   :  { %10 = vsyncpa [#allocation3 + $0x1], 0  ;;  %s839_s12 = smov 0   ;;  %s841_s13 = smov 0  }
   0x2   :  { %s843_s14 = smov 0   ;;  %s845_s15 = smov 0  }
   0x3   :  { %s847_s16 = smov 0   ;;  %s849_s17 = smov 0  }
   0x4 LB: > { %s621_s18 = sadd.s32 4294967295, %s813_s17   ;;  %s622_s19 = sadd.s32 4294967294, %s813_s17   ;;  %s813_s17 = sphi %s849_s17, %s16_s17   ;;  %s809_s16 = sphi %s847_s16, %s1030_s16   ;;  %s805_s15 = sphi %s845_s15, %s1029_s15   ;;  %s801_s14 = sphi %s843_s14, %s1028_s14   ;;  %s797_s13 = sphi %s841_s13, %s1027_s13   ;;  %s793_s12 = sphi %s839_s12, %s1026_s12  }
   0x5   : > { %s28_s20 = sadd.s32 1, %s809_s16  ;;  %s107_s21 = sadd.s32 1, %s801_s14 }
   0x6   : > { %p30_p0 = scmp.ge.s32.totalorder %s28_s20, 2  ;;  %p117_p1 = scmp.ne.s32.totalorder %s801_s14, %s797_s13 }
   0x7   : > { %p118_p2 = scmp.eq.s32.totalorder %s621_s18, 1  ;;  %p123_p3 = scmp.ne.s32.totalorder %s797_s13, %s793_s12 }
   0x8   : > { %s1032_s20 = smov (%p30_p0, %s28_s20), 0  ;;  %p124_p5 = scmp.eq.s32.totalorder %s622_s19, 1 }
   0x9   : > { %p879_p4 = por %p118_p2, %p117_p1  ;;  %s102_s23 = ssub.s32 %s809_s16, %s1032_s20 }
   0xa   : > { %p625_p6 = scmp.ge.s32.totalorder %s813_s17, 1  ;;  %p105_p7 = scmp.eq.s32.totalorder %s102_s23, 0 }
   0xb   : > { %p886_p8 = por %p124_p5, %p123_p3  ;;  %p161_p9 = scmp.lt.s32.totalorder %s813_s17, 3 }
   0xc   : > { %s892_s25 = scalar_select %p105_p7, %s801_s14, %s107_s21  }
   0xd   : > { %p162_p10 = pnand %p625_p6, %p161_p9 }
   0xe   : > { %p190_p11 = scmp.lt.s32.totalorder (!%p162_p10), %s805_s15, 1  ;;  %v815_v0 = vmov (!%p162_p10), 0   ;;  %v225_v1 = vld [vmem:[%s1022_s2 + $0x10] sm:$0xff] (!%p162_p10)  ;;  %v223_v2 = vld [vmem:[%s1022_s2] sm:$0xff] (!%p162_p10)  ;;  %v226_v3 = vld [vmem:[%s1022_s2 + $0x18] sm:$0xff] (!%p162_p10)  ;;  %vm264_vm0 = vcmask (!%p162_p10), 1041408  }
   0xf   : > { %165 = sbr.rel (%p162_p10) target bundleno = 286 (0x11e), region = 32  ;;  %315 = vmatprep.mubr.bf16.mxu0 (!%p162_p10), %v815_v0  ;;  %325 = vmatprep.mubr.bf16.mxu1 (!%p162_p10), %v815_v0  ;;  %v224_v4 = vld [vmem:[%s1022_s2 + $0x8] sm:$0xff] (!%p162_p10)  ;;  %v731_v18 = vld [vmem:[%s1021_s1] sm:$0xff] (!%p162_p10)   ;;  %vm257_vm1 = vcmask (!%p162_p10), 31744   ;;  %s816_s8 = smov (!%p162_p10), [#allocation2]  }
  0x10   : > { %729 = vset.pattern.permute.xlu1 (!%p162_p10), %v815_v0  ;;  %728 = vset.pattern.permute.xlu0 (!%p162_p10), %v815_v0  ;;  %v732_v19 = vld [vmem:[%s1021_s1 + $0x8] sm:$0xff] (!%p162_p10)   ;;  %s669_s29 = smul.u32 (!%p162_p10), 1536, %s805_s15  ;;  %s739_s9 = sshll.u32 (!%p162_p10), %s816_s8, 4  ;;  %s740_s9 = int_to_ptr.vmem [resolvable:$false] %s739_s9 }
  0x11   : > { %239 = vperm.xlu1 (!%p162_p10), %729, %v225_v1   ;;  %229 = vperm.xlu0 (!%p162_p10), %728, %v223_v2   ;;  %s741_s10 = scalar_lea.vmem (!%p162_p10), %s740_s9, 3072 }
  0x12   : > { %s964_s5 = scalar_lea.hbm (!%p162_p10), %s1023_s3, %s669_s29 }
  0x15   : > { %244 = vperm.xlu1 (!%p162_p10), %729, %v226_v3   ;;  %234 = vperm.xlu0 (!%p162_p10), %728, %v224_v4  }
  0x16   : > { %s191_s26 = scalar_select %p190_p11, %s805_s15, 1 }
  0x18   : > { %s668_s4 = smul.u32 24, %s191_s26  ;;  %s186_s26 = sand.u32 1, %s797_s13  }
  0x19   : > { %s667_s27 = smul.u32 96, %s186_s26  ;;  %s974_s6 = scalar_lea.sflag [#allocation3], %s186_s26 }
  0x1a   : > { %s197_s11 = scalar_lea.vmem %s1020_s0, %s668_s4 }
  0x1b   : > { %v201_v5 = vld [vmem:[%s197_s11] sm:$0xff]  ;;  %v202_v6 = vld [vmem:[%s197_s11 + $0x8] sm:$0xff]  ;;  %v203_v7 = vld [vmem:[%s197_s11 + $0x10] sm:$0xff]  ;;  %s941_s28 = scalar_lea.vmem [#allocation2], %s667_s27 }
  0x1c   : > { %v207_v8 = vcombine.high %v201_v5, %v201_v5  ;;  %v213_v9 = vpack.c.bf16 %v201_v5, %v201_v5  ;;  %v208_v10 = vcombine.high %v202_v6, %v202_v6  ;;  %v209_v11 = vcombine.high %v203_v7, %v203_v7  ;;  %s542_s30 = sshll.u32 %s941_s28, 4  ;;  %s966_s30 = int_to_ptr.vmem [resolvable:$true] %s542_s30 }
  0x1d   : > { %v215_v12 = vpack.c.bf16 %v202_v6, %v202_v6  ;;  %v217_v13 = vpack.c.bf16 %v203_v7, %v203_v7  ;;  %s735_s7 = scalar_lea.vmem %s966_s30, 1536  ;;  %p742_p1 = scmp.lt.s32.totalorder %s966_s30, %s740_s9 }
  0x1e   : > { %v214_v14 = vpack.c.bf16 %v207_v8, %v207_v8  ;;  %v266_v15 = vsel %vm264_vm0, %v213_v9, 0  ;;  %v216_v16 = vpack.c.bf16 %v208_v10, %v208_v10  ;;  %v218_v17 = vpack.c.bf16 %v209_v11, %v209_v11  ;;  %p736_p12 = scmp.ne.s32.totalorder %s966_s30, %s735_s7  ;;  %p743_p2 = scmp.lt.s32.totalorder %s741_s10, %s735_s7 }
  0x1f   : > { %v272_v20 = vsel %vm264_vm0, %v215_v12, 0  ;;  %v278_v21 = vsel %vm264_vm0, %v217_v13, 0 }
  0x20   : > { %629 = vmatprep.subr.msk.bf16.mxu0 %vm264_vm0, %v214_v14  ;;  %665 = vmatprep.subr.msk.bf16.mxu1 %vm264_vm0, %v214_v14  ;;  %p737_p13 = pnand %p736_p12, %p879_p4  ;;  %p744_p3 = por %p743_p2, %p742_p1 }
  0x21   : > { %284 = vmatpush1.bf16.msra.mxu0 %v266_v15  ;;  %666 = vmatpush1.bf16.msra.mxu1 %v266_v15 }
  0x22   : > { %632 = vmatprep.subr.msk.bf16.mxu1 %vm264_vm0, %v216_v16  ;;  %635 = vmatprep.subr.msk.bf16.mxu0 %vm264_vm0, %v218_v17  ;;  %p738_p0 = pneg %p737_p13 }
  0x24   : > { %630 = vmatmul.mubr.msk.bf16.vlgmr.msra.gmra.mrb[0].mxu0 %vm257_vm1, %v731_v18  ;;  %631 = vmatmul.mubr.msk.bf16.vlgmr.msra.gmra.mrb[0].mxu1 %vm257_vm1, %v732_v19  ;;  %p745_p5 = pnand %p744_p3, %p738_p0 }
  0x25   : > { %337 = vmatpush1.bf16.msra.mxu1 %v272_v20  ;;  %390 = vmatpush1.bf16.msra.mxu0 %v278_v21 }
  0x26   : > { %368 = vmatprep.mubr.bf16.mxu1 %v815_v0  ;;  %421 = vmatprep.mubr.bf16.mxu0 %v815_v0 }
  0x2c   : > { %633 = vmatmul.mubr.msk.bf16.vlgmr.msra.gmra.mrb[4].mxu1 %vm257_vm1, %v731_v18  ;;  %636 = vmatmul.mubr.msk.bf16.vlgmr.msra.gmra.mrb[4].mxu0 %vm257_vm1, %v731_v18 }
  0x2d   : > { %378 = vmatprep.mubr.bf16.mxu1 %v815_v0  ;;  %431 = vmatprep.mubr.bf16.mxu0 %v815_v0 }
  0x34   : > { %634 = vmatmul.mubr.msk.bf16.gmra.mrb[8].mxu1 %vm257_vm1, %v732_v19  ;;  %637 = vmatmul.mubr.msk.bf16.gmra.mrb[8].mxu0 %vm257_vm1, %v732_v19 }
  0x90   : > { %v930_v22 = vpop.permute.xlu1 %239  ;;  %v230_v23 = vpop.permute.xlu0 %229 }
  0x94   : > { %v935_v24 = vpop.permute.xlu1 %244  ;;  %v235_v25 = vpop.permute.xlu0 %234 }
  0xf7   : > { %v317_v26 = vpop.f32.mrb[0].mxu0  ;;  %v327_v27 = vpop.f32.mrb[0].mxu1 }
  0xf8   : > { %v318_v28 = vadd.f32 %v317_v26, %v230_v23  ;;  %v328_v29 = vadd.f32 %v327_v27, %v930_v22  ;;  %v319_v30 = vpop.f32.mrb[1].mxu0  ;;  %v329_v31 = vpop.f32.mrb[1].mxu1 }
  0xf9   : > { %v320_v32 = vadd.f32 %v319_v30, %v230_v23  ;;  %v330_v33 = vadd.f32 %v329_v31, %v930_v22  ;;  %v321_v34 = vpop.f32.mrb[2].mxu0  ;;  %v331_v35 = vpop.f32.mrb[2].mxu1 }
  0xfa   : > { %v322_v36 = vadd.f32 %v321_v34, %v235_v25  ;;  %v332_v37 = vadd.f32 %v331_v35, %v935_v24  ;;  %v323_v38 = vpop.f32.mrb[3].mxu0  ;;  %v333_v39 = vpop.f32.mrb[3].mxu1 }
  0xfb   : > { %v653_v40 = vpack.c.bf16 %v320_v32, %v318_v28  ;;  %v659_v41 = vpack.c.bf16 %v330_v33, %v328_v29  ;;  %v324_v42 = vadd.f32 %v323_v38, %v235_v25  ;;  %v334_v43 = vadd.f32 %v333_v39, %v935_v24 }
  0xfd   : > { %514 = vst [vmem:[%s941_s28] sm:$0xff] %v653_v40  ;;  %520 = vst [vmem:[%s941_s28 + $0x30] sm:$0xff] %v659_v41  ;;  %v656_v44 = vpack.c.bf16 %v324_v42, %v322_v36  ;;  %v662_v45 = vpack.c.bf16 %v334_v43, %v332_v37 }
  0xff   : > { %517 = vst [vmem:[%s941_s28 + $0x18] sm:$0xff] %v656_v44  ;;  %523 = vst [vmem:[%s941_s28 + $0x48] sm:$0xff] %v662_v45  ;;  %v370_v46 = vpop.f32.mrb[4].mxu1  ;;  %v423_v47 = vpop.f32.mrb[4].mxu0 }
 0x100   : > { %v371_v48 = vadd.f32 %v370_v46, %v230_v23  ;;  %v424_v49 = vadd.f32 %v423_v47, %v230_v23  ;;  %v372_v50 = vpop.f32.mrb[5].mxu1  ;;  %v425_v51 = vpop.f32.mrb[5].mxu0 }
 0x101   : > { %v373_v52 = vadd.f32 %v372_v50, %v230_v23  ;;  %v426_v53 = vadd.f32 %v425_v51, %v230_v23  ;;  %v374_v54 = vpop.f32.mrb[6].mxu1  ;;  %v427_v55 = vpop.f32.mrb[6].mxu0 }
 0x102   : > { %v375_v56 = vadd.f32 %v374_v54, %v235_v25  ;;  %v428_v57 = vadd.f32 %v427_v55, %v235_v25  ;;  %v376_v58 = vpop.f32.mrb[7].mxu1  ;;  %v429_v59 = vpop.f32.mrb[7].mxu0 }
 0x103   : > { %v654_v60 = vpack.c.bf16 %v373_v52, %v371_v48  ;;  %v655_v61 = vpack.c.bf16 %v426_v53, %v424_v49  ;;  %v377_v62 = vadd.f32 %v376_v58, %v235_v25  ;;  %v430_v63 = vadd.f32 %v429_v59, %v235_v25 }
 0x105   : > { %515 = vst [vmem:[%s941_s28 + $0x8] sm:$0xff] %v654_v60  ;;  %516 = vst [vmem:[%s941_s28 + $0x10] sm:$0xff] %v655_v61  ;;  %v657_v0 = vpack.c.bf16 %v377_v62, %v375_v56  ;;  %v658_v1 = vpack.c.bf16 %v430_v63, %v428_v57 }
 0x107   : > { %518 = vst [vmem:[%s941_s28 + $0x20] sm:$0xff] %v657_v0  ;;  %519 = vst [vmem:[%s941_s28 + $0x28] sm:$0xff] %v658_v1  ;;  %v380_v2 = vpop.f32.mrb[8].mxu1  ;;  %v433_v3 = vpop.f32.mrb[8].mxu0 }
 0x108   : > { %v381_v4 = vadd.f32 %v380_v2, %v930_v22  ;;  %v434_v5 = vadd.f32 %v433_v3, %v930_v22  ;;  %v382_v6 = vpop.f32.mrb[9].mxu1  ;;  %v435_v7 = vpop.f32.mrb[9].mxu0 }
 0x109   : > { %v383_v8 = vadd.f32 %v382_v6, %v930_v22  ;;  %v436_v9 = vadd.f32 %v435_v7, %v930_v22  ;;  %v384_v10 = vpop.f32.mrb[10].mxu1  ;;  %v437_v11 = vpop.f32.mrb[10].mxu0 }
 0x10a   : > { %v385_v12 = vadd.f32 %v384_v10, %v935_v24  ;;  %v438_v13 = vadd.f32 %v437_v11, %v935_v24  ;;  %v386_v14 = vpop.f32.mrb[11].mxu1  ;;  %v439_v15 = vpop.f32.mrb[11].mxu0 }
 0x10b   : > { %v660_v16 = vpack.c.bf16 %v383_v8, %v381_v4  ;;  %v661_v17 = vpack.c.bf16 %v436_v9, %v434_v5  ;;  %v387_v18 = vadd.f32 %v386_v14, %v935_v24  ;;  %v440_v19 = vadd.f32 %v439_v15, %v935_v24 }
 0x10d   : > { %521 = vst [vmem:[%s941_s28 + $0x38] sm:$0xff] %v660_v16  ;;  %522 = vst [vmem:[%s941_s28 + $0x40] sm:$0xff] %v661_v17  ;;  %v663_v20 = vpack.c.bf16 %v387_v18, %v385_v12  ;;  %v664_v21 = vpack.c.bf16 %v440_v19, %v438_v13 }
 0x10f   : > { %524 = vst [vmem:[%s941_s28 + $0x50] sm:$0xff] %v663_v20  ;;  %525 = vst [vmem:[%s941_s28 + $0x58] sm:$0xff] %v664_v21 }
 0x110   : > { %748 = shalt.err (!%p745_p5)
}
 0x111   : > { %s749_s11 = scalar_lea.hbm %s964_s5, 1536  ;;  %s753_s21 = scalar_lea.hbm %s1023_s3, 3072 }
 0x112   : > { %p750_p6 = scmp.ne.s32.totalorder %s964_s5, %s749_s11  ;;  %p754_p10 = scmp.lt.u32.totalorder %s964_s5, %s1023_s3 }
 0x113   : > { %p755_p11 = scmp.lt.u32.totalorder %s753_s21, %s749_s11  ;;  %p757_p13 = scmp.lt.u32.totalorder %s749_s11, %s964_s5 }
 0x114   : > { %p751_p7 = pnand %p750_p6, %p879_p4 }
 0x115   : > { %p756_p12 = por %p755_p11, %p754_p10 }
 0x116   : > { %p752_p9 = pneg %p751_p7 }
 0x117   : > { %p758_p0 = por %p757_p13, %p756_p12 }
 0x119   : > { %p759_p1 = pnand %p758_p0, %p752_p9 }
 0x11b   : > { %762 = shalt.err (!%p759_p1)
}
 0x11c   : > { %s817_s27 = smov 384   ;;  %s818_s28 = smov 24  }
 0x11d   : > { %670 = dma.vmem_to_hbm [thread:$0]  (%p879_p4), %s966_s30, 1536, %s964_s5, %s974_s6, %s817_s27, %s817_s27, %s818_s28  }
 0x11e PF: > { %p676_p2 = scmp.ge.s32.totalorder %s813_s17, 2  ;;  %s557_s29 = sand.u32 1, %s793_s12  }
 0x11f   : > { %s558_s15 = scalar_lea.sflag [#allocation3], %s557_s29 }
 0x120   : > { %p673_p3 = pnand %p676_p2, %p886_p8 }
 0x122   : > { %788 = dma.done.wait (!%p673_p3), %s558_s15, 1536  }
 0x123   : > { %790 = vsyncadd (!%p673_p3), %s558_s15, 4294965760  ;;  %s16_s17 = sadd.s32 1, %s813_s17   ;;  %s1026_s12 = smov %s797_s13 }
 0x124   : > { %p13_p5 = scmp.ge.s32.totalorder %s16_s17, 4   ;;  %s1027_s13 = smov %s801_s14 }
 0x125   : > { %s1028_s14 = smov %s892_s25  ;;  %s1029_s15 = smov %s809_s16 }
 0x126   : > { %s1030_s16 = smov %s1032_s20  ;;  %15 = sbr.rel (!%p13_p5) target bundleno = 4 (0x4), region = 67 }
 0x12d   :  { %563 = vsyncpa [#allocation3], 1 }
 0x12e   :  { %565 = vsyncpa [#allocation3 + $0x1], 1 }

</bundles_post_ra>
